<compile_context>
chip_gen: v5e
topology: v5e:2x2
jax: 0.10.0
libtpu: 0.0.40
codegen_flags: <defaults>
</compile_context>

<pallas_src>
import math

import jax
import jax.numpy as jnp
from jax import lax
from jax.experimental import pallas as pl
from jax.experimental.pallas import tpu as pltpu

LANE = 128
SUBLANE = 8


def _round_up(x, m):
    return ((x + m - 1) // m) * m


def _vmem_cap_bytes():
    """Physical VMEM capacity of the attached TPU; conservative fallback = 64 MiB (v7x)."""
    try:
        return int(pltpu.get_tpu_info().vmem_capacity_bytes)
    except Exception:
        return 64 << 20


def _phrase_emb_kernel(idx_ref, table_ref, pos_ref, out_ref):
    """One grid step handles one tile of TT flattened tokens.

    idx_ref:   (TT, 1)        int32   flattened token ids for this tile
    table_ref: (V_pad, H_pad) float32 zero-padded embedding table (VMEM resident, 1 buffer)
    pos_ref:   (TT, H_pad)    float32 constant positional tile (same for every grid step)
    out_ref:   (TT, H_pad)    float32
    """
    tt = out_ref.shape[0]
    v_pad = table_ref.shape[0]

    idx = idx_ref[...]                                        # (TT, 1)

    # Lane-dense one-hot: vocab (contraction) dim on the lane axis.
    viota = lax.broadcasted_iota(jnp.int32, (tt, v_pad), 1)   # (TT, V_pad)
    onehot = (viota == idx).astype(jnp.float32)

    # Gather via one (TT, V_pad) x (V_pad, H_pad) MXU matmul.  HIGHEST precision keeps the
    # f32 table exact against the 0/1 operand (default precision could truncate to bf16).
    emb = lax.dot_general(
        onehot,
        table_ref[...],
        dimension_numbers=(((1,), (0,)), ((), ())),
        preferred_element_type=jnp.float32,
        precision=lax.Precision.HIGHEST,
    )

    out_ref[...] = emb + pos_ref[...]


def phrase_embedding_forward(phrase, emb_table, pos_emb, *, token_tile=1024):
    """phrase: (B, L) int; emb_table: (V, H) f32; pos_emb: (128, H) f32.

    Returns (B, L, H) f32 == emb_table[phrase] + pos_emb[:L]  (PyTorch forward).
    """
    B, L = phrase.shape
    V, H = emb_table.shape
    T = B * L

    # ---- wrapper-side layout plumbing -----------------------------------------------------
    V_pad = _round_up(V, LANE)                    # lane-dense contraction dim
    H_pad = _round_up(H, LANE)                    # lane-dense output stores

    # Token tile: multiple of L (so one constant pos tile is exact for every grid step)
    # and of the sublane width; prefer T_pad == T when it fits in a single tile.
    unit = math.lcm(L, SUBLANE)
    if T <= token_tile:
        TT = _round_up(T, unit)
    else:
        TT = max((token_tile // unit) * unit, unit)
    T_pad = _round_up(T, TT)

    # Padded table (skip the copy entirely when already aligned).
    table_p = emb_table.astype(jnp.float32)
    if (V_pad, H_pad) != (V, H):
        table_p = jnp.pad(table_p, ((0, V_pad - V), (0, H_pad - H)))

    # One constant positional tile: row r of the tile gets pos_emb[r % L]; since TT % L == 0
    # this is correct for every grid step (padded tokens are sliced off below).
    pos_L = pos_emb[:L].astype(jnp.float32)
    if H_pad != H:
        pos_L = jnp.pad(pos_L, ((0, 0), (0, H_pad - H)))
    pos_tile = jnp.tile(pos_L, (TT // L, 1))                  # (TT, H_pad)

    # Flattened ids; padding ids with 0 is safe (padded rows are sliced off).
    idx = phrase.reshape(T).astype(jnp.int32)
    if T_pad != T:
        idx = jnp.pad(idx, (0, T_pad - T))
    idx = idx.reshape(T_pad, 1)

    grid = (T_pad // TT,)

    # ---- explicit VMEM budget (per-spec buffer counts) ------------------------------------
    bytes_idx = 2 * TT * LANE * 4          # (TT,1) block lane-pads to 128, double-buffered
    bytes_table = V_pad * H_pad * 4        # single-buffered (Buffered(1))
    bytes_pos = TT * H_pad * 4             # single-buffered constant tile
    bytes_out = 2 * TT * H_pad * 4         # double-buffered
    bytes_tmp = TT * V_pad * 4             # in-kernel one-hot materialization
    vmem_needed = bytes_idx + bytes_table + bytes_pos + bytes_out + bytes_tmp
    vmem_limit = int(min(max(int(vmem_needed * 1.25), 4 << 20),
                         int(0.75 * _vmem_cap_bytes())))

    out = pl.pallas_call(
        _phrase_emb_kernel,
        out_shape=jax.ShapeDtypeStruct((T_pad, H_pad), jnp.float32),
        grid=grid,
        in_specs=[
            # flattened token ids (changes per step -> default double buffering)
            pl.BlockSpec((TT, 1), lambda i: (i, 0)),
            # whole padded table, VMEM resident; constant index_map -> single buffer
            pl.BlockSpec((V_pad, H_pad), lambda i: (0, 0),
                         pipeline_mode=pl.Buffered(1)),
            # constant positional tile; single buffer
            pl.BlockSpec((TT, H_pad), lambda i: (0, 0),
                         pipeline_mode=pl.Buffered(1)),
        ],
        out_specs=pl.BlockSpec((TT, H_pad), lambda i: (i, 0)),
        compiler_params=pltpu.CompilerParams(
            # Token-tile axis carries no state: genuinely parallel (engages v7x's 2nd core;
            # neutral on single-TC v5e/v6e).
            dimension_semantics=("parallel",),
            vmem_limit_bytes=vmem_limit,
        ),
    )(idx, table_p, pos_tile)

    # Free reshape when no padding was added; otherwise slice token/hidden padding away.
    if H_pad == H and T_pad == T:
        return out.reshape(B, L, H)
    return out[:T, :H].reshape(B, L, H)


if __name__ == "__main__":
    # Module hyper-params (small, consistent with the forward pass)
    vocab_len = 32
    max_phrase_len = 16   # kept for fidelity with __init__ signature; unused by forward
    hid_dim = 32
    B, L = 2, 8

    key = jax.random.PRNGKey(0)
    k_tok, k_emb, k_pos = jax.random.split(key, 3)

    # NOTE: the PyTorch __init__ zero-inits both phrase_emb.weight and pos_emb;
    # we use deterministic non-zero values so the kernel computes something non-trivial.
    emb_table = jax.random.normal(k_emb, (vocab_len, hid_dim), dtype=jnp.float32) * 0.02
    pos_emb = jax.random.normal(k_pos, (128, hid_dim), dtype=jnp.float32) * 0.02
    phrase = jax.random.randint(k_tok, (B, L), 0, vocab_len, dtype=jnp.int32)

    out = phrase_embedding_forward(phrase, emb_table, pos_emb)
    out = jax.block_until_ready(out)

    # Pure-JAX reference for correctness.
    ref = emb_table[phrase] + pos_emb[:L][None, :, :]
    assert out.shape == (B, L, hid_dim)
    assert out.dtype == jnp.float32
    assert jnp.allclose(out, ref, atol=1e-5, rtol=1e-5), "mismatch vs reference"

    print("KERNEL_OK")
</pallas_src>

<mosaic_0001>
module attributes {stable_mosaic.version = 11 : i64} {
  func.func @_phrase_emb_kernel(%arg0: i32, %arg1: memref<16x1xi32, #tpu.memory_space<vmem>>, %arg2: memref<128x128xf32, #tpu.memory_space<vmem>>, %arg3: memref<16x128xf32, #tpu.memory_space<vmem>>, %arg4: memref<16x128xf32, #tpu.memory_space<vmem>>) attributes {dimension_semantics = [#tpu.dimension_semantics<parallel>], iteration_bounds = array<i64: 1>, scalar_prefetch = 0 : i64, scratch_operands = 0 : i64, tpu.core_type = #tpu.core_type<tc>, window_params = [{transform_indices = @transform_0, window_bounds = array<i64: 16, 1>}, {pipeline_mode = #tpu.pipeline_mode<synchronous>, transform_indices = @transform_1, window_bounds = array<i64: 128, 128>}, {pipeline_mode = #tpu.pipeline_mode<synchronous>, transform_indices = @transform_2, window_bounds = array<i64: 16, 128>}, {transform_indices = @transform_3, window_bounds = array<i64: 16, 128>}]} {
    %c0 = arith.constant 0 : index
    %c0_0 = arith.constant 0 : index
    %0 = vector.load %arg1[%c0, %c0_0] : memref<16x1xi32, #tpu.memory_space<vmem>>, vector<16x1xi32>
    %1 = tpu.iota {dimensions = array<i32: 1>} : vector<16x128xi32>
    %2 = vector.broadcast %0 : vector<16x1xi32> to vector<16x128xi32>
    %3 = arith.cmpi eq, %1, %2 : vector<16x128xi32>
    %4 = arith.extui %3 : vector<16x128xi1> to vector<16x128xi32>
    %5 = arith.sitofp %4 : vector<16x128xi32> to vector<16x128xf32>
    %c0_1 = arith.constant 0 : index
    %c0_2 = arith.constant 0 : index
    %6 = vector.load %arg2[%c0_1, %c0_2] : memref<128x128xf32, #tpu.memory_space<vmem>>, vector<128x128xf32>
    %cst = arith.constant dense<0.000000e+00> : vector<16x128xf32>
    %7 = tpu.matmul %5, %6, %cst {dimension_numbers = #tpu.dot_dimension_numbers<[1], [0], [0], [1], [0, 0, 1, 1], [], []>, precision = #tpu.contract_precision<fp32>} : vector<16x128xf32>, vector<128x128xf32>, vector<16x128xf32> -> vector<16x128xf32>
    %c0_3 = arith.constant 0 : index
    %c0_4 = arith.constant 0 : index
    %8 = vector.load %arg3[%c0_3, %c0_4] : memref<16x128xf32, #tpu.memory_space<vmem>>, vector<16x128xf32>
    %9 = arith.addf %7, %8 : vector<16x128xf32>
    %c0_5 = arith.constant 0 : index
    %c0_6 = arith.constant 0 : index
    %10 = vector.load %arg4[%c0_5, %c0_6] : memref<16x128xf32, #tpu.memory_space<vmem>>, vector<16x128xf32>
    tpu.vector_store %arg4[%c0_5, %c0_6], %9 {strides = array<i32>} : memref<16x128xf32, #tpu.memory_space<vmem>>, vector<16x128xf32>,
    return
  }
  func.func @transform_0(%arg0: i32) -> (i32, i32) {
    %c0_i32 = arith.constant 0 : i32
    %c0_i32_0 = arith.constant 0 : i32
    return %arg0, %c0_i32 : i32, i32
  }
  func.func @transform_1(%arg0: i32) -> (i32, i32) {
    %c0_i32 = arith.constant 0 : i32
    %c0_i32_0 = arith.constant 0 : i32
    %c0_i32_1 = arith.constant 0 : i32
    return %c0_i32, %c0_i32_0 : i32, i32
  }
  func.func @transform_2(%arg0: i32) -> (i32, i32) {
    %c0_i32 = arith.constant 0 : i32
    %c0_i32_0 = arith.constant 0 : i32
    %c0_i32_1 = arith.constant 0 : i32
    return %c0_i32, %c0_i32_0 : i32, i32
  }
  func.func @transform_3(%arg0: i32) -> (i32, i32) {
    %c0_i32 = arith.constant 0 : i32
    %c0_i32_0 = arith.constant 0 : i32
    return %arg0, %c0_i32 : i32, i32
  }
}

</mosaic_0001>

<bundles_post_ra>
// kernel: tpu_custom_call.1
= control target key start
LH: loop header
LB: loop body
LE: loop exit
PB: predicated region body
PF: predicated region fallthrough
CT: control target
= control target key end

     0   :  { %8 = vsyncpa [#allocation3], 0  ;;  %s805_s0 = inlined_call_operand.vmem [shape: s32[16,1], index: 0, kind: input, shape index: {}]   ;;  %s806_s1 = inlined_call_operand.hbm [shape: f32[128,128], index: 1, kind: input, shape index: {}]   ;;  %s807_s2 = inlined_call_operand.vmem [shape: f32[16,128], index: 2, kind: input, shape index: {}]   ;;  %s808_s3 = inlined_call_operand.hbm [shape: f32[16,128], index: 3, kind: output, shape index: {}]  }
   0x1   :  { %9 = vsyncpa [#allocation4], 0  ;;  %s16_s14 = sshll.u32 %s806_s1, 4  ;;  %s558_s15 = smov [#allocation2]   ;;  %s17_s14 = int_to_ptr.hbm [resolvable:$true] %s16_s14 }
   0x2   :  { %s18_s16 = sshll.u32 %s558_s15, 4  ;;  %s559_s17 = smov 128   ;;  %s19_s16 = int_to_ptr.vmem [resolvable:$true] %s18_s16 }
   0x3   :  { %s560_s18 = smov 8  }
   0x4   :  { %24 = dma.hbm_to_vmem [thread:$0]  %s17_s14, 2048, %s19_s16, [#allocation3], %s559_s17, %s559_s17, %s560_s18  }
   0x5   :  { %554 = dma.done.wait [#allocation3], 2048  }
   0x6   :  { %555 = vsyncadd [#allocation3], 4294965248  ;;  %v561_v0 = vmov 0   ;;  %v31_v1 = vld [vmem:[%s805_s0] sm:$0xff]  ;;  %v62_v2 = vld [vmem:[#allocation2 + $0x78] sm:$0xff]  ;;  %s564_s25 = smov [#allocation5]  }
   0x7   :  { %505 = vset.pattern.permute.xlu0 %v561_v0  ;;  %v594_v3 = vand.u32 4294901760, %v62_v2  ;;  %v61_v4 = vld [vmem:[#allocation2 + $0x70] sm:$0xff]  ;;  %v60_v5 = vld [vmem:[#allocation2 + $0x68] sm:$0xff]  ;;  %v59_v6 = vld [vmem:[#allocation2 + $0x60] sm:$0xff]  ;;  %s443_s26 = sshll.u32 %s564_s25, 4  ;;  %s444_s26 = int_to_ptr.vmem [resolvable:$true] %s443_s26 }
   0x8   :  { %36 = vperm.xlu0 %505, %v31_v1   ;;  %v596_v7 = vand.u32 4294901760, %v61_v4  ;;  %v598_v8 = vand.u32 4294901760, %v60_v5  ;;  %v600_v9 = vand.u32 4294901760, %v59_v6  ;;  %v58_v10 = vld [vmem:[#allocation2 + $0x58] sm:$0xff]  ;;  %v57_v11 = vld [vmem:[#allocation2 + $0x50] sm:$0xff]  ;;  %v56_v12 = vld [vmem:[#allocation2 + $0x48] sm:$0xff] }
   0x9   :  { %v115_v13 = vsub.f32 %v62_v2, %v594_v3  ;;  %279 = vmatpush.msra.mxu3 %v594_v3  ;;  %v604_v14 = vand.u32 4294901760, %v58_v10  ;;  %66 = vmatpush.msra.mxu0 %v594_v3  ;;  %v607_v15 = vand.u32 4294901760, %v57_v11  ;;  %v609_v16 = vand.u32 4294901760, %v56_v12  ;;  %v55_v17 = vld [vmem:[#allocation2 + $0x40] sm:$0xff]  ;;  %v32_v25 = vld [vmem:[%s805_s0 + $0x8] sm:$0xff]  ;;  %v54_v35 = vld [vmem:[#allocation2 + $0x38] sm:$0xff] }
   0xa   :  { %v121_v18 = vsub.f32 %v61_v4, %v596_v7  ;;  %v127_v19 = vsub.f32 %v60_v5, %v598_v8  ;;  %v133_v20 = vsub.f32 %v59_v6, %v600_v9  ;;  %v614_v21 = vand.u32 4294901760, %v55_v17  ;;  %v53_v39 = vld [vmem:[#allocation2 + $0x30] sm:$0xff]  ;;  %v52_v40 = vld [vmem:[#allocation2 + $0x28] sm:$0xff]  ;;  %v51_v43 = vld [vmem:[#allocation2 + $0x20] sm:$0xff] }
   0xb   :  { %v616_v22 = vand.u32 4294901760, %v115_v13  ;;  %221 = vmatpush.msra.mxu2 %v115_v13  ;;  %281 = vmatpush.msra.mxu3 %v596_v7  ;;  %v139_v23 = vsub.f32 %v58_v10, %v604_v14  ;;  %v145_v24 = vsub.f32 %v57_v11, %v607_v15  ;;  %v151_v29 = vsub.f32 %v56_v12, %v609_v16  ;;  %v50_v50 = vld [vmem:[#allocation2 + $0x18] sm:$0xff]  ;;  %v49_v57 = vld [vmem:[#allocation2 + $0x10] sm:$0xff]  ;;  %v48_v63 = vld [vmem:[#allocation2 + $0x8] sm:$0xff] }
   0xc   :  { %v624_v26 = vand.u32 4294901760, %v121_v18  ;;  %v626_v27 = vand.u32 4294901760, %v127_v19  ;;  %v628_v28 = vand.u32 4294901760, %v133_v20  ;;  %68 = vmatpush.msra.mxu0 %v596_v7  ;;  %v157_v34 = vsub.f32 %v55_v17, %v614_v21  ;;  %v47_v6 = vld [vmem:[#allocation2] sm:$0xff] }
   0xd   :  { %v117_v30 = vsub.f32 %v115_v13, %v616_v22  ;;  %224 = vmatpush.msra.mxu2 %v121_v18  ;;  %v633_v31 = vand.u32 4294901760, %v139_v23  ;;  %283 = vmatpush.msra.mxu3 %v598_v8  ;;  %v641_v38 = vand.u32 4294901760, %v145_v24  ;;  %v644_v42 = vand.u32 4294901760, %v151_v29 }
   0xe   :  { %v123_v32 = vsub.f32 %v121_v18, %v624_v26  ;;  %v129_v33 = vsub.f32 %v127_v19, %v626_v27  ;;  %70 = vmatpush.msra.mxu0 %v598_v8  ;;  %v135_v37 = vsub.f32 %v133_v20, %v628_v28  ;;  %v648_v46 = vand.u32 4294901760, %v54_v35 }
   0xf   :  { %v118_v36 = vand.u32 4294901760, %v117_v30  ;;  %227 = vmatpush.msra.mxu2 %v127_v19  ;;  %285 = vmatpush.msra.mxu3 %v600_v9  ;;  %v141_v45 = vsub.f32 %v139_v23, %v633_v31  ;;  %v651_v47 = vand.u32 4294901760, %v157_v34  ;;  %v654_v48 = vand.u32 4294901760, %v53_v39 }
  0x10   :  { %39 = vperm.xlu0 %505, %v32_v25   ;;  %v124_v41 = vand.u32 4294901760, %v123_v32  ;;  %72 = vmatpush.msra.mxu0 %v600_v9  ;;  %v130_v44 = vand.u32 4294901760, %v129_v33  ;;  %v656_v49 = vand.u32 4294901760, %v52_v40  ;;  %v136_v51 = vand.u32 4294901760, %v135_v37 }
  0x11   :  { %119 = vmatpush.msra.mxu1 %v118_v36  ;;  %230 = vmatpush.msra.mxu2 %v133_v20  ;;  %v147_v52 = vsub.f32 %v145_v24, %v641_v38  ;;  %v163_v53 = vsub.f32 %v54_v35, %v648_v46  ;;  %v660_v54 = vand.u32 4294901760, %v51_v43  ;;  %v153_v55 = vsub.f32 %v151_v29, %v644_v42 }
  0x12   :  { %287 = vmatpush.msra.mxu3 %v604_v14  ;;  %74 = vmatpush.msra.mxu0 %v604_v14  ;;  %v169_v56 = vsub.f32 %v53_v39, %v654_v48  ;;  %v142_v58 = vand.u32 4294901760, %v141_v45  ;;  %v175_v60 = vsub.f32 %v52_v40, %v656_v49  ;;  %v669_v61 = vand.u32 4294901760, %v50_v50 }
  0x13   :  { %125 = vmatpush.msra.mxu1 %v124_v41  ;;  %233 = vmatpush.msra.mxu2 %v139_v23  ;;  %v666_v59 = vand.u32 4294901760, %v163_v53  ;;  %v159_v62 = vsub.f32 %v157_v34, %v651_v47  ;;  %v148_v0 = vand.u32 4294901760, %v147_v52  ;;  %v181_v2 = vsub.f32 %v51_v43, %v660_v54 }
  0x14   :  { %289 = vmatpush.msra.mxu3 %v607_v15  ;;  %76 = vmatpush.msra.mxu0 %v607_v15  ;;  %v674_v1 = vand.u32 4294901760, %v169_v56  ;;  %v677_v4 = vand.u32 4294901760, %v49_v57  ;;  %v154_v5 = vand.u32 4294901760, %v153_v55  ;;  %v682_v11 = vand.u32 4294901760, %v175_v60 }
  0x15   :  { %131 = vmatpush.msra.mxu1 %v130_v44  ;;  %236 = vmatpush.msra.mxu2 %v145_v24  ;;  %v165_v10 = vsub.f32 %v163_v53, %v666_v59  ;;  %v187_v12 = vsub.f32 %v50_v50, %v669_v61  ;;  %v685_v13 = vand.u32 4294901760, %v48_v63  ;;  %v160_v17 = vand.u32 4294901760, %v159_v62 }
  0x16   :  { %291 = vmatpush.msra.mxu3 %v609_v16  ;;  %78 = vmatpush.msra.mxu0 %v609_v16  ;;  %v171_v18 = vsub.f32 %v169_v56, %v674_v1  ;;  %v690_v19 = vand.u32 4294901760, %v181_v2  ;;  %v193_v20 = vsub.f32 %v49_v57, %v677_v4  ;;  %v693_v23 = vand.u32 4294901760, %v47_v6  ;;  %v64_v57 = vld [vmem:[%s807_s2 + $0x8] sm:$0xff] }
  0x17   :  { %137 = vmatpush.msra.mxu1 %v136_v51  ;;  %239 = vmatpush.msra.mxu2 %v151_v29  ;;  %v166_v24 = vand.u32 4294901760, %v165_v10  ;;  %v177_v25 = vsub.f32 %v175_v60, %v682_v11  ;;  %v698_v29 = vand.u32 4294901760, %v187_v12  ;;  %v199_v30 = vsub.f32 %v48_v63, %v685_v13 }
  0x18   :  { %293 = vmatpush.msra.mxu3 %v614_v21  ;;  %80 = vmatpush.msra.mxu0 %v614_v21  ;;  %v172_v32 = vand.u32 4294901760, %v171_v18  ;;  %v183_v33 = vsub.f32 %v181_v2, %v690_v19  ;;  %v205_v35 = vsub.f32 %v47_v6, %v693_v23 }
  0x19   :  { %143 = vmatpush.msra.mxu1 %v142_v58  ;;  %242 = vmatpush.msra.mxu2 %v157_v34  ;;  %v704_v34 = vand.u32 4294901760, %v193_v20  ;;  %v178_v36 = vand.u32 4294901760, %v177_v25  ;;  %v189_v37 = vsub.f32 %v187_v12, %v698_v29  ;;  %v710_v39 = vand.u32 4294901760, %v199_v30 }
  0x1a   :  { %295 = vmatpush.msra.mxu3 %v648_v46  ;;  %82 = vmatpush.msra.mxu0 %v648_v46  ;;  %v184_v40 = vand.u32 4294901760, %v183_v33  ;;  %v715_v43 = vand.u32 4294901760, %v205_v35 }
  0x1b   :  { %149 = vmatpush.msra.mxu1 %v148_v0  ;;  %245 = vmatpush.msra.mxu2 %v163_v53  ;;  %v195_v41 = vsub.f32 %v193_v20, %v704_v34  ;;  %v190_v44 = vand.u32 4294901760, %v189_v37  ;;  %v201_v45 = vsub.f32 %v199_v30, %v710_v39 }
  0x1c   :  { %297 = vmatpush.msra.mxu3 %v654_v48  ;;  %84 = vmatpush.msra.mxu0 %v654_v48  ;;  %v207_v51 = vsub.f32 %v205_v35, %v715_v43 }
  0x1d   :  { %155 = vmatpush.msra.mxu1 %v154_v5  ;;  %248 = vmatpush.msra.mxu2 %v169_v56  ;;  %v196_v50 = vand.u32 4294901760, %v195_v41  ;;  %v202_v52 = vand.u32 4294901760, %v201_v45 }
  0x1e   :  { %299 = vmatpush.msra.mxu3 %v656_v49  ;;  %86 = vmatpush.msra.mxu0 %v656_v49  ;;  %v208_v53 = vand.u32 4294901760, %v207_v51 }
  0x1f   :  { %161 = vmatpush.msra.mxu1 %v160_v17  ;;  %251 = vmatpush.msra.mxu2 %v175_v60 }
  0x20   :  { %301 = vmatpush.msra.mxu3 %v660_v54  ;;  %88 = vmatpush.msra.mxu0 %v660_v54 }
  0x21   :  { %167 = vmatpush.msra.mxu1 %v166_v24  ;;  %254 = vmatpush.msra.mxu2 %v181_v2 }
  0x22   :  { %303 = vmatpush.msra.mxu3 %v669_v61  ;;  %90 = vmatpush.msra.mxu0 %v669_v61 }
  0x23   :  { %173 = vmatpush.msra.mxu1 %v172_v32  ;;  %257 = vmatpush.msra.mxu2 %v187_v12 }
  0x24   :  { %305 = vmatpush.msra.mxu3 %v677_v4  ;;  %92 = vmatpush.msra.mxu0 %v677_v4 }
  0x25   :  { %179 = vmatpush.msra.mxu1 %v178_v36  ;;  %260 = vmatpush.msra.mxu2 %v193_v20 }
  0x26   :  { %307 = vmatpush.msra.mxu3 %v685_v13  ;;  %94 = vmatpush.msra.mxu0 %v685_v13 }
  0x27   :  { %185 = vmatpush.msra.mxu1 %v184_v40  ;;  %263 = vmatpush.msra.mxu2 %v199_v30 }
  0x28   :  { %309 = vmatpush.msra.mxu3 %v693_v23  ;;  %96 = vmatpush.msra.mxu0 %v693_v23 }
  0x29   :  { %191 = vmatpush.msra.mxu1 %v190_v44  ;;  %266 = vmatpush.msra.mxu2 %v205_v35 }
  0x2a   :  { %482 = vmatpush.msrb.mxu3 %v594_v3  ;;  %326 = vmatpush.msrb.mxu0 %v616_v22 }
  0x2b   :  { %466 = vmatpush.msrb.mxu2 %v616_v22  ;;  %197 = vmatpush.msra.mxu1 %v196_v50 }
  0x2c   :  { %483 = vmatpush.msrb.mxu3 %v596_v7  ;;  %330 = vmatpush.msrb.mxu0 %v624_v26 }
  0x2d   :  { %467 = vmatpush.msrb.mxu2 %v624_v26  ;;  %203 = vmatpush.msra.mxu1 %v202_v52 }
  0x2e   :  { %484 = vmatpush.msrb.mxu3 %v598_v8  ;;  %334 = vmatpush.msrb.mxu0 %v626_v27 }
  0x2f   :  { %468 = vmatpush.msrb.mxu2 %v626_v27  ;;  %209 = vmatpush.msra.mxu1 %v208_v53 }
  0x30   :  { %485 = vmatpush.msrb.mxu3 %v600_v9  ;;  %338 = vmatpush.msrb.mxu0 %v628_v28 }
  0x31   :  { %397 = vmatpush.msrb.mxu1 %v594_v3  ;;  %469 = vmatpush.msrb.mxu2 %v628_v28  ;;  %v33_v3 = vlaneseq }
  0x32   :  { %486 = vmatpush.msrb.mxu3 %v604_v14  ;;  %342 = vmatpush.msrb.mxu0 %v633_v31 }
  0x33   :  { %399 = vmatpush.msrb.mxu1 %v596_v7  ;;  %470 = vmatpush.msrb.mxu2 %v633_v31  ;;  %v34_v7 = vand.u32 127, %v33_v3 }
  0x34   :  { %487 = vmatpush.msrb.mxu3 %v607_v15  ;;  %346 = vmatpush.msrb.mxu0 %v641_v38 }
  0x35   :  { %401 = vmatpush.msrb.mxu1 %v598_v8  ;;  %471 = vmatpush.msrb.mxu2 %v641_v38 }
  0x36   :  { %488 = vmatpush.msrb.mxu3 %v609_v16  ;;  %350 = vmatpush.msrb.mxu0 %v644_v42 }
  0x37   :  { %403 = vmatpush.msrb.mxu1 %v600_v9  ;;  %472 = vmatpush.msrb.mxu2 %v644_v42  ;;  %v562_v9 = vmov 1.0  }
  0x38   :  { %489 = vmatpush.msrb.mxu3 %v614_v21  ;;  %354 = vmatpush.msrb.mxu0 %v651_v47 }
  0x39   :  { %405 = vmatpush.msrb.mxu1 %v604_v14  ;;  %473 = vmatpush.msrb.mxu2 %v651_v47  ;;  %v563_v14 = vmov 0.0  }
  0x3a   :  { %490 = vmatpush.msrb.mxu3 %v648_v46  ;;  %358 = vmatpush.msrb.mxu0 %v666_v59 }
  0x3b   :  { %407 = vmatpush.msrb.mxu1 %v607_v15  ;;  %474 = vmatpush.msrb.mxu2 %v666_v59 }
  0x3c   :  { %491 = vmatpush.msrb.mxu3 %v654_v48  ;;  %362 = vmatpush.msrb.mxu0 %v674_v1 }
  0x3d   :  { %409 = vmatpush.msrb.mxu1 %v609_v16  ;;  %475 = vmatpush.msrb.mxu2 %v674_v1 }
  0x3e   :  { %492 = vmatpush.msrb.mxu3 %v656_v49  ;;  %366 = vmatpush.msrb.mxu0 %v682_v11 }
  0x3f   :  { %411 = vmatpush.msrb.mxu1 %v614_v21  ;;  %476 = vmatpush.msrb.mxu2 %v682_v11 }
  0x40   :  { %493 = vmatpush.msrb.mxu3 %v660_v54  ;;  %370 = vmatpush.msrb.mxu0 %v690_v19 }
  0x41   :  { %413 = vmatpush.msrb.mxu1 %v648_v46  ;;  %477 = vmatpush.msrb.mxu2 %v690_v19 }
  0x42   :  { %494 = vmatpush.msrb.mxu3 %v669_v61  ;;  %374 = vmatpush.msrb.mxu0 %v698_v29 }
  0x43   :  { %415 = vmatpush.msrb.mxu1 %v654_v48  ;;  %478 = vmatpush.msrb.mxu2 %v698_v29  ;;  %v63_v48 = vld [vmem:[%s807_s2] sm:$0xff]  ;;  %s445_s2 = sshll.u32 %s808_s3, 4  ;;  %s446_s2 = int_to_ptr.hbm [resolvable:$true] %s445_s2 }
  0x44   :  { %495 = vmatpush.msrb.mxu3 %v677_v4  ;;  %378 = vmatpush.msrb.mxu0 %v704_v34 }
  0x45   :  { %417 = vmatpush.msrb.mxu1 %v656_v49  ;;  %479 = vmatpush.msrb.mxu2 %v704_v34 }
  0x46   :  { %496 = vmatpush.msrb.mxu3 %v685_v13  ;;  %382 = vmatpush.msrb.mxu0 %v710_v39 }
  0x47   :  { %419 = vmatpush.msrb.mxu1 %v660_v54  ;;  %480 = vmatpush.msrb.mxu2 %v710_v39 }
  0x48   :  { %497 = vmatpush.msrb.mxu3 %v693_v23  ;;  %386 = vmatpush.msrb.mxu0 %v715_v43 }
  0x49   :  { %421 = vmatpush.msrb.mxu1 %v669_v61  ;;  %481 = vmatpush.msrb.mxu2 %v715_v43 }
  0x4b   :  { %423 = vmatpush.msrb.mxu1 %v677_v4 }
  0x4d   :  { %425 = vmatpush.msrb.mxu1 %v685_v13 }
  0x4f   :  { %427 = vmatpush.msrb.mxu1 %v693_v23 }
  0x7a   :  { %v37_v8 = vpop.permute.xlu0 %36 }
  0x7b   :  { %vm41_vm0 = vcmp.eq.s32.totalorder %v34_v7, %v37_v8 }
  0x7c   :  { %460 = vmatmul.msk.f32.vlgmr.msra.gmra.mxu1 %vm41_vm0, %v562_v9  ;;  %v458_v15 = vsel %vm41_vm0, 1.0, %v563_v14 }
  0x7d   :  { %v98_v16 = vsub.f32 %v458_v15, %v458_v15 }
  0x7f   :  { %269 = vmatmul.f32.vlgmr.msra.gmra.mxu2 %v98_v16  ;;  %v99_v21 = vand.u32 4294901760, %v98_v16 }
  0x81   :  { %313 = vmatmul.f32.vlgmr.msra.gmra.mxu3 %v99_v21  ;;  %v100_v22 = vsub.f32 %v98_v16, %v99_v21 }
  0x82   :  { %v40_v26 = vpop.permute.xlu0 %39 }
  0x83   :  { %vm42_vm1 = vcmp.eq.s32.totalorder %v34_v7, %v40_v26  ;;  %v101_v27 = vand.u32 4294901760, %v100_v22 }
  0x84   :  { %461 = vmatmul.msk.f32.gmra.mxu1 %vm42_vm1, %v562_v9  ;;  %v459_v28 = vsel %vm42_vm1, 1.0, %v563_v14 }
  0x85   :  { %102 = vmatmul.f32.vlgmr.msra.gmra.mxu0 %v101_v27  ;;  %v106_v31 = vsub.f32 %v459_v28, %v459_v28 }
  0x87   :  { %274 = vmatmul.f32.gmra.mxu2 %v106_v31  ;;  %v107_v38 = vand.u32 4294901760, %v106_v31 }
  0x89   :  { %319 = vmatmul.f32.gmra.mxu3 %v107_v38  ;;  %v108_v42 = vsub.f32 %v106_v31, %v107_v38 }
  0x8b   :  { %v109_v46 = vand.u32 4294901760, %v108_v42 }
  0x8c   :  { %464 = vmatmul.msk.f32.vlgmr.msrb.gmra.mxu1 %vm41_vm0, %v562_v9 }
  0x8d   :  { %110 = vmatmul.f32.gmra.mxu0 %v109_v46 }
  0x8f   :  { %463 = vmatmul.msk.f32.vlgmr.msrb.gmra.mxu2 %vm42_vm1, %v562_v9 }
  0x91   :  { %465 = vmatmul.msk.f32.vlgmr.msrb.gmra.mxu3 %vm42_vm1, %v562_v9 }
  0x95   :  { %462 = vmatmul.msk.f32.vlgmr.msrb.gmra.mxu0 %vm41_vm0, %v562_v9 }
  0xf9   :  { %v212_v47 = vpop.f32.mrf.mxu1 }
 0x101   :  { %v216_v58 = vpop.f32.mrf.mxu1 }
 0x102   :  { %v103_v49 = vpop.f32.mrf.mxu0  ;;  %v270_v54 = vpop.f32.mrf.mxu2 }
 0x103   :  { %v104_v56 = vadd.f32 %v103_v49, %v63_v48 }
 0x104   :  { %v314_v55 = vpop.f32.mrf.mxu3 }
 0x105   :  { %v213_v59 = vadd.f32 %v212_v47, %v104_v56 }
 0x107   :  { %v271_v0 = vadd.f32 %v270_v54, %v213_v59 }
 0x109   :  { %v315_v4 = vadd.f32 %v314_v55, %v271_v0  ;;  %v430_v13 = vpop.f32.mrf.mxu1 }
 0x10a   :  { %v111_v60 = vpop.f32.mrf.mxu0  ;;  %v275_v61 = vpop.f32.mrf.mxu2 }
 0x10b   :  { %v112_v62 = vadd.f32 %v111_v60, %v64_v57 }
 0x10c   :  { %v320_v63 = vpop.f32.mrf.mxu3 }
 0x10d   :  { %v217_v1 = vadd.f32 %v216_v58, %v112_v62 }
 0x10f   :  { %v276_v2 = vadd.f32 %v275_v61, %v217_v1 }
 0x111   :  { %v321_v5 = vadd.f32 %v320_v63, %v276_v2 }
 0x112   :  { %v389_v6 = vpop.f32.mrf.mxu0  ;;  %v393_v10 = vpop.f32.mrf.mxu2 }
 0x113   :  { %v390_v11 = vadd.f32 %v389_v6, %v315_v4  ;;  %v394_v12 = vadd.f32 %v393_v10, %v321_v5 }
 0x114   :  { %v434_v17 = vpop.f32.mrf.mxu3 }
 0x115   :  { %v431_v18 = vadd.f32 %v430_v13, %v390_v11  ;;  %v435_v19 = vadd.f32 %v434_v17, %v394_v12 }
 0x117   :  { %437 = vst [vmem:[#allocation5] sm:$0xff] %v431_v18 }
 0x118   :  { %438 = vst [vmem:[#allocation5 + $0x8] sm:$0xff] %v435_v19 }
 0x119   :  { %451 = dma.vmem_to_hbm [thread:$0]  %s444_s26, 256, %s446_s2, [#allocation4], %s559_s17, %s559_s17, %s560_s18  }
 0x11a   :  { %556 = dma.done.wait [#allocation4], 256  }
 0x11b   :  { %557 = vsyncadd [#allocation4], 4294967040 }
 0x11c   :  { %456 = vsyncpa [#allocation3], 1 }
 0x11d   :  { %457 = vsyncpa [#allocation4], 1 }

</bundles_post_ra>
